<compile_context>
chip_gen: v7x
topology: tpu7x:2x2x1
jax: 0.10.0
libtpu: 0.0.40
codegen_flags: <defaults>
</compile_context>

<pallas_src>
import functools
import math

import numpy as np
import jax
import jax.numpy as jnp
from jax import lax
from jax.experimental import pallas as pl
from jax.experimental.pallas import tpu as pltpu


# ---------------------------------------------------------------------------
# Kernels (pure data movement: XLU rolls + VPU selects; exact for any dtype).
# ---------------------------------------------------------------------------


def _flip_odd_rows_pow2_kernel(x_ref, o_ref, *, W):
    """Power-of-two W on a flat lane-dense (tb, L) block.

    out[j] = x[j ^ (W-1)] where bit log2(W) of the position is set (odd grid
    row), else x[j].  The XOR data movement is built from log2(W) static
    rotate+select stages; rolls never select a wrapped element because
    j ^ k stays inside the same W-aligned group.
    """
    x_rev = x_ref[...]                                   # (tb, L)
    L = x_rev.shape[-1]
    j = lax.broadcasted_iota(jnp.int32, x_rev.shape, 1)  # destination position
    for bit in range(W.bit_length() - 1):                # log2(W) static stages
        k = 1 << bit
        hi = pltpu.roll(x_rev, (L - k) % L, 1)           # [j] <- x_rev[j + k]
        lo = pltpu.roll(x_rev, k, 1)                     # [j] <- x_rev[j - k]
        x_rev = jnp.where((j & k) == 0, hi, lo)
    # Row parity of position j is bit log2(W).  Re-read x_ref for the final
    # select so the original tile need not stay live across the roll chain.
    o_ref[...] = jnp.where((j & W) != 0, x_rev, x_ref[...])


def _flip_odd_rows_mixed_kernel(x_ref, a_ref, b_ref, odd_ref, o_ref, *, p, q):
    """General W = 2**p * q (q odd) on a flat lane-dense (tb, L) block.

    Control vectors (1, L) int32 are precomputed on host from the in-sequence
    column c = (j mod S) mod W (no vector div/mod in the kernel):
      a_ref   = c // q   (bit-flipped by the p butterfly stages)
      b_ref   = c %  q   (reversed by the q in-group stages)
      odd_ref = row parity of the position.
    """
    # TODO(synk): collapse the q-stage (q roll+select passes) into a single
    # lane reverse once a reverse/flip lowering is available in Pallas TPU.
    x_rev = x_ref[...]
    L = x_rev.shape[-1]
    if p:
        a = a_ref[...]                                   # (1, L), broadcasts
        for bit in range(p):                             # bit-flip a at stride q
            k = (1 << bit) * q
            hi = pltpu.roll(x_rev, (L - k) % L, 1)       # [j] <- x_rev[j + k]
            lo = pltpu.roll(x_rev, k, 1)                 # [j] <- x_rev[j - k]
            x_rev = jnp.where((a & (1 << bit)) == 0, hi, lo)
    if q > 1:
        b = b_ref[...]
        src = x_rev
        for b0 in range(q):                              # reverse b in each group
            shift = (2 * b0 - (q - 1)) % L               # [b0] <- src[q-1-b0]
            x_rev = jnp.where(b == b0, pltpu.roll(src, shift, 1), x_rev)
    o_ref[...] = jnp.where(odd_ref[...] != 0, x_rev, x_ref[...])


# ---------------------------------------------------------------------------
# Tiling helpers (generation-aware VMEM budget, >= 4 grid steps when possible).
# ---------------------------------------------------------------------------


def _round_up(x, m):
    return ((x + m - 1) // m) * m


def _vmem_capacity_bytes():
    try:
        return int(pltpu.get_tpu_info().vmem_capacity_bytes)
    except Exception:
        return 64 << 20            # conservative default (v7x per-TensorCore)


def _vmem_limit_bytes():
    # Scoped-VMEM limit with headroom for compiler scratch:
    # 96 MiB on 128 MiB parts (v5e/v6e), 48 MiB on 64 MiB parts (v7x).
    return int(min(_vmem_capacity_bytes() * 3 // 4, 96 << 20))


def _pick_block_b(B, row_bytes, *, min_grid_steps=4):
    """Batch-tile rows: largest multiple-of-8 divisor of B that (a) keeps the
    in+out double-buffered tiles inside a generation-aware VMEM budget and
    (b) leaves >= min_grid_steps grid steps when the batch allows it, so the
    BlockSpec pipeline overlaps HBM DMA with compute and both v7x TensorCores
    get work via the "parallel" grid axis."""
    budget = _vmem_limit_bytes() // 8      # in+out, double-buffered, 2x slack
    rows_fit = max(1, budget // max(1, row_bytes))
    divisors = [d for d in range(8, B + 1, 8) if B % d == 0]
    if not divisors:
        return B                           # B < 8 or no multiple-of-8 divisor
    cap = min(rows_fit, max(8, B // min_grid_steps))
    fitting = [d for d in divisors if d <= cap]
    return max(fitting) if fitting else divisors[0]


def _control_vectors(S, W, q, L):
    j = np.arange(L, dtype=np.int64)
    col = (j % S) % W
    a = (col // q).astype(np.int32)
    b = (col % q).astype(np.int32)
    odd = (((j % S) // W) & 1).astype(np.int32)
    as_row = lambda v: jnp.asarray(v.reshape(1, L))
    return as_row(a), as_row(b), as_row(odd)


# ---------------------------------------------------------------------------
# Wrapper
# ---------------------------------------------------------------------------


def _boustrophedon_permute(x, H, W):
    """out[:, r*W + c] = x[:, r*W + (W-1-c)] for odd r, identity for even r."""
    B, S = x.shape
    assert S == H * W, f"expected sequence length {H * W}, got {S}"
    if H == 1 or W == 1 or B == 0:
        return x                           # permutation is the identity

    itemsize = jnp.dtype(x.dtype).itemsize

    # Fold batch rows so the last (lane) dim is a multiple of 128: contiguous
    # DMA tiles, unmasked full-lane stores, minimal VMEM padding.
    fold = 1
    if S % 128 != 0:
        f = 128 // math.gcd(S, 128)
        if B % f == 0:
            fold = f
    L, Bf = S * fold, B // fold
    xf = x if fold == 1 else x.reshape(Bf, L)

    tb = _pick_block_b(Bf, _round_up(L, 128) * itemsize)
    grid = (Bf // tb,)
    data_spec = pl.BlockSpec((tb, L), lambda i: (i, 0))
    cost = pl.CostEstimate(flops=0, transcendentals=0,
                           bytes_accessed=2 * B * S * itemsize)
    # NOTE: input_output_aliases={0: 0} would also be valid (the permutation
    # is block-local) and would drop the extra HBM output allocation, but is
    # left off so the caller's input buffer is never implicitly donated.
    params = pltpu.CompilerParams(dimension_semantics=("parallel",),
                                  vmem_limit_bytes=_vmem_limit_bytes())

    pow2_w = (W & (W - 1)) == 0
    if pow2_w and (fold == 1 or (S & (S - 1)) == 0):
        # Power-of-two path: masks come from an in-kernel iota, no extra inputs.
        out = pl.pallas_call(
            functools.partial(_flip_odd_rows_pow2_kernel, W=W),
            out_shape=jax.ShapeDtypeStruct((Bf, L), x.dtype),
            grid=grid,
            in_specs=[data_spec],
            out_specs=data_spec,
            compiler_params=params,
            cost_estimate=cost,
        )(xf)
    else:
        p = (W & -W).bit_length() - 1      # W = 2**p * q with q odd
        q = W >> p
        a_vec, b_vec, odd_vec = _control_vectors(S, W, q, L)
        ctrl_spec = pl.BlockSpec((1, L), lambda i: (0, 0))
        out = pl.pallas_call(
            functools.partial(_flip_odd_rows_mixed_kernel, p=p, q=q),
            out_shape=jax.ShapeDtypeStruct((Bf, L), x.dtype),
            grid=grid,
            in_specs=[data_spec, ctrl_spec, ctrl_spec, ctrl_spec],
            out_specs=data_spec,
            compiler_params=params,
            cost_estimate=cost,
        )(xf, a_vec, b_vec, odd_vec)

    return out if fold == 1 else out.reshape(B, S)


class AlternateParsingPallas:
    """JAX/Pallas port of taming.modules.transformer.permuter.AlternateParsing.

    The boustrophedon permutation is an involution (argsort(idx) == idx), so
    forward and reverse are the same data movement and share one kernel.
    """

    def __init__(self, H, W, *, xla_gather_below_bytes=1 << 20):
        self.H, self.W = int(H), int(W)
        indices = np.arange(W * H).reshape(H, W)
        for i in range(1, H, 2):
            indices[i, :] = indices[i, ::-1]
        idx = indices.flatten()
        assert len(idx) == H * W
        assert np.array_equal(np.argsort(idx), idx)   # involution
        self.forward_shuffle_idx = jnp.asarray(idx, dtype=jnp.int32)
        self.backward_shuffle_idx = jnp.asarray(np.argsort(idx), dtype=jnp.int32)
        # Below this size XLA's native gather (already one HBM-bound copy)
        # beats kernel-launch / per-grid-step overhead for a standalone permute.
        self.xla_gather_below_bytes = int(xla_gather_below_bytes)

    def __call__(self, x, reverse=False):
        del reverse                        # involution: both directions equal
        nbytes = x.size * jnp.dtype(x.dtype).itemsize
        if nbytes < self.xla_gather_below_bytes:
            return x[:, self.forward_shuffle_idx]
        return _boustrophedon_permute(x, self.H, self.W)


if __name__ == "__main__":
    def check(perm, x, name):
        y = jax.block_until_ready(perm(x, reverse=False))
        x_rec = jax.block_until_ready(perm(y, reverse=True))
        y_ref = x[:, perm.forward_shuffle_idx]
        assert y.shape == x.shape and y.dtype == x.dtype, name
        assert jnp.array_equal(y, y_ref), f"{name}: forward mismatch"
        assert jnp.array_equal(x_rec, y_ref[:, perm.backward_shuffle_idx]), (
            f"{name}: reverse mismatch")
        assert jnp.array_equal(x_rec, x), f"{name}: roundtrip mismatch"

    key = jax.random.PRNGKey(0)
    k1, k2, k3, k4 = jax.random.split(key, 4)

    # 1) spec-sized 8x8 grid (S=64 < 128): exercises batch-row folding to a
    #    lane-dense 128-wide block, int32 tokens.
    H, W, B = 8, 8, 4
    x1 = jax.random.randint(k1, (B, H * W), 0, 1024, dtype=jnp.int32)
    check(AlternateParsingPallas(H, W, xla_gather_below_bytes=0), x1, "8x8/int32")

    # 2) 16x16 grid, already lane-dense (S=256), float32.
    x2 = jax.random.normal(k2, (8, 16 * 16), dtype=jnp.float32)
    check(AlternateParsingPallas(16, 16, xla_gather_below_bytes=0), x2, "16x16/f32")

    # 3) non-power-of-two width (H=6, W=12): mixed-radix kernel (p=2, q=3),
    #    folded 16x to a 1152-lane block.
    x3 = jax.random.normal(k3, (16, 6 * 12), dtype=jnp.float32)
    check(AlternateParsingPallas(6, 12, xla_gather_below_bytes=0), x3, "6x12/f32")

    # 4) 32x32 grid, batch 64: multi-step "parallel" grid (16-row tiles -> 4
    #    pipelined / megacore-shardable steps).
    x4 = jax.random.normal(k4, (64, 32 * 32), dtype=jnp.float32)
    check(AlternateParsingPallas(32, 32, xla_gather_below_bytes=0), x4, "32x32/f32")

    # 5) default dispatch: tiny problems take the plain XLA gather path.
    check(AlternateParsingPallas(H, W), x1, "8x8/default-dispatch")

    print("KERNEL_OK")
</pallas_src>

<mosaic_0001>
module attributes {stable_mosaic.version = 11 : i64} {
  func.func @_flip_odd_rows_pow2_kernel(%arg0: i32, %arg1: memref<2x128xi32, #tpu.memory_space<vmem>>, %arg2: memref<2x128xi32, #tpu.memory_space<vmem>>) attributes {dimension_semantics = [#tpu.dimension_semantics<parallel>], iteration_bounds = array<i64: 1>, scalar_prefetch = 0 : i64, scratch_operands = 0 : i64, tpu.core_type = #tpu.core_type<tc>, window_params = [{transform_indices = @transform_0, window_bounds = array<i64: 2, 128>}, {transform_indices = @transform_1, window_bounds = array<i64: 2, 128>}]} {
    %c0 = arith.constant 0 : index
    %c0_0 = arith.constant 0 : index
    %0 = vector.load %arg1[%c0, %c0_0] : memref<2x128xi32, #tpu.memory_space<vmem>>, vector<2x128xi32>
    %1 = tpu.iota {dimensions = array<i32: 1>} : vector<2x128xi32>
    %c127_i32 = arith.constant 127 : i32
    %2 = tpu.dynamic_rotate %0 by %c127_i32 dim 1 : vector<2x128xi32>, i32 -> vector<2x128xi32>
    %c1_i32 = arith.constant 1 : i32
    %3 = tpu.dynamic_rotate %0 by %c1_i32 dim 1 : vector<2x128xi32>, i32 -> vector<2x128xi32>
    %c1_i32_1 = arith.constant 1 : i32
    %4 = vector.broadcast %c1_i32_1 : i32 to vector<2x128xi32>
    %5 = arith.andi %1, %4 : vector<2x128xi32>
    %c0_i32 = arith.constant 0 : i32
    %6 = vector.broadcast %c0_i32 : i32 to vector<2x128xi32>
    %7 = arith.cmpi eq, %5, %6 : vector<2x128xi32>
    %8 = arith.select %7, %2, %3 : vector<2x128xi1>, vector<2x128xi32>
    %c126_i32 = arith.constant 126 : i32
    %9 = tpu.dynamic_rotate %8 by %c126_i32 dim 1 : vector<2x128xi32>, i32 -> vector<2x128xi32>
    %c2_i32 = arith.constant 2 : i32
    %10 = tpu.dynamic_rotate %8 by %c2_i32 dim 1 : vector<2x128xi32>, i32 -> vector<2x128xi32>
    %c2_i32_2 = arith.constant 2 : i32
    %11 = vector.broadcast %c2_i32_2 : i32 to vector<2x128xi32>
    %12 = arith.andi %1, %11 : vector<2x128xi32>
    %c0_i32_3 = arith.constant 0 : i32
    %13 = vector.broadcast %c0_i32_3 : i32 to vector<2x128xi32>
    %14 = arith.cmpi eq, %12, %13 : vector<2x128xi32>
    %15 = arith.select %14, %9, %10 : vector<2x128xi1>, vector<2x128xi32>
    %c124_i32 = arith.constant 124 : i32
    %16 = tpu.dynamic_rotate %15 by %c124_i32 dim 1 : vector<2x128xi32>, i32 -> vector<2x128xi32>
    %c4_i32 = arith.constant 4 : i32
    %17 = tpu.dynamic_rotate %15 by %c4_i32 dim 1 : vector<2x128xi32>, i32 -> vector<2x128xi32>
    %c4_i32_4 = arith.constant 4 : i32
    %18 = vector.broadcast %c4_i32_4 : i32 to vector<2x128xi32>
    %19 = arith.andi %1, %18 : vector<2x128xi32>
    %c0_i32_5 = arith.constant 0 : i32
    %20 = vector.broadcast %c0_i32_5 : i32 to vector<2x128xi32>
    %21 = arith.cmpi eq, %19, %20 : vector<2x128xi32>
    %22 = arith.select %21, %16, %17 : vector<2x128xi1>, vector<2x128xi32>
    %c8_i32 = arith.constant 8 : i32
    %23 = vector.broadcast %c8_i32 : i32 to vector<2x128xi32>
    %24 = arith.andi %1, %23 : vector<2x128xi32>
    %c0_i32_6 = arith.constant 0 : i32
    %25 = vector.broadcast %c0_i32_6 : i32 to vector<2x128xi32>
    %26 = arith.cmpi ne, %24, %25 : vector<2x128xi32>
    %c0_7 = arith.constant 0 : index
    %c0_8 = arith.constant 0 : index
    %27 = vector.load %arg1[%c0_7, %c0_8] : memref<2x128xi32, #tpu.memory_space<vmem>>, vector<2x128xi32>
    %28 = arith.select %26, %22, %27 : vector<2x128xi1>, vector<2x128xi32>
    %c0_9 = arith.constant 0 : index
    %c0_10 = arith.constant 0 : index
    %29 = vector.load %arg2[%c0_9, %c0_10] : memref<2x128xi32, #tpu.memory_space<vmem>>, vector<2x128xi32>
    tpu.vector_store %arg2[%c0_9, %c0_10], %28 {strides = array<i32>} : memref<2x128xi32, #tpu.memory_space<vmem>>, vector<2x128xi32>,
    return
  }
  func.func @transform_0(%arg0: i32) -> (i32, i32) {
    %c0_i32 = arith.constant 0 : i32
    %c0_i32_0 = arith.constant 0 : i32
    return %arg0, %c0_i32 : i32, i32
  }
  func.func @transform_1(%arg0: i32) -> (i32, i32) {
    %c0_i32 = arith.constant 0 : i32
    %c0_i32_0 = arith.constant 0 : i32
    return %arg0, %c0_i32 : i32, i32
  }
}

</mosaic_0001>

<bundles_post_ra>
// kernel: tpu_custom_call.1
= control target key start
LH: loop header
LB: loop body
LE: loop exit
PB: predicated region body
PF: predicated region fallthrough
CT: control target
= control target key end

     0   :  { %6 = vsyncpa [#allocation3], 0  ;;  %s162_s0 = inlined_call_operand.hbm [shape: s32[2,128], index: 0, kind: input, shape index: {}]   ;;  %s163_s1 = inlined_call_operand.hbm [shape: s32[2,128], index: 1, kind: output, shape index: {}]  }
   0x1   :  { %7 = vsyncpa [#allocation4], 0  ;;  %s120_s6 = smov [#allocation2]   ;;  %s72_s10 = scalar_lea.hbm %s162_s0, 32 }
   0x2   :  { %s14_s7 = sshll.u32 %s120_s6, 4  ;;  %p73_p0 = scmp.ne.s32.totalorder %s162_s0, %s72_s10  ;;  %s15_s7 = int_to_ptr.vmem [resolvable:$true] %s14_s7 }
   0x3   :  { %p76_p1 = scmp.lt.u32.totalorder %s72_s10, %s162_s0 }
   0x5   :  { %p78_p2 = pnand %p76_p1, %p73_p0 }
   0x7   :  { %81 = shalt.err (!%p78_p2)
}
   0x8   :  { %s82_s15 = scalar_lea.vmem %s15_s7, 32  ;;  %p87_p4 = scmp.lt.s32.totalorder %s15_s7, %s15_s7 }
   0x9   :  { %p83_p3 = scmp.ne.s32.totalorder %s15_s7, %s82_s15  ;;  %p88_p5 = scmp.lt.s32.totalorder %s82_s15, %s82_s15 }
   0xb   :  { %p89_p6 = por %p88_p5, %p87_p4 }
   0xd   :  { %p90_p7 = pnand %p89_p6, %p83_p3 }
   0xf   :  { %93 = shalt.err (!%p90_p7)
}
  0x10   :  { %17 = dma.hbm_to_vmem [thread:$0]  %s162_s0, 32, %s15_s7, [#allocation3]  }
  0x11   :  { %116 = dma.done.wait [#allocation3], 32  }
  0x12   :  { %117 = vsyncadd [#allocation3], 4294967264  ;;  %v21_v0 = vld [vmem:[#allocation2] sm:$0x3]  ;;  %s121_s18 = smov 127   ;;  %s122_s19 = smov 1   ;;  %v22_v1 = vlaneseq }
  0x13   :  { %24 = vrot.lane.b32.xlu0 %v21_v0, %s121_s18  ;;  %s123_s20 = smov 126   ;;  %s124_s21 = smov 2  }
  0x14   :  { %v23_v2 = vand.u32 127, %v22_v1  ;;  %s125_s0 = smov 4   ;;  %s126_s22 = smov 124  }
  0x15   :  { %s127_s23 = smov [#allocation5]  }
  0x16   :  { %v28_v3 = vand.u32 1, %v23_v2  ;;  %v35_v7 = vand.u32 2, %v23_v2  ;;  %v42_v11 = vand.u32 4, %v23_v2  ;;  %v45_v12 = vand.u32 8, %v23_v2  ;;  %s55_s24 = sshll.u32 %s127_s23, 4  ;;  %s56_s24 = int_to_ptr.vmem [resolvable:$true] %s55_s24 }
  0x17   :  { %26 = vrot.lane.b32.xlu0 %v21_v0, %s122_s19  ;;  %s94_s25 = scalar_lea.vmem %s56_s24, 32  ;;  %p99_p9 = scmp.lt.s32.totalorder %s56_s24, %s56_s24 }
  0x18   :  { %vm29_vm0 = vcmp.eq.s32.totalorder %v28_v3, 0  ;;  %vm36_vm1 = vcmp.eq.s32.totalorder %v35_v7, 0  ;;  %vm43_vm2 = vcmp.eq.s32.totalorder %v42_v11, 0  ;;  %vm46_vm3 = vcmp.ne.s32.totalorder %v45_v12, 0  ;;  %p95_p8 = scmp.ne.s32.totalorder %s56_s24, %s94_s25  ;;  %p100_p10 = scmp.lt.s32.totalorder %s94_s25, %s94_s25 }
  0x1a   :  { %p101_p11 = por %p100_p10, %p99_p9 }
  0x1c   :  { %p102_p12 = pnand %p101_p11, %p95_p8 }
  0x85   :  { %v25_v4 = vpop.permute.xlu0 %24 }
  0x89   :  { %v27_v5 = vpop.permute.xlu0 %26 }
  0x8a   :  { %v30_v6 = vsel %vm29_vm0, %v25_v4, %v27_v5 }
  0x8b   :  { %31 = vrot.lane.b32.xlu1 %v30_v6, %s123_s20 }
  0x8f   :  { %33 = vrot.lane.b32.xlu1 %v30_v6, %s124_s21 }
  0xfd   :  { %v32_v8 = vpop.permute.xlu1 %31 }
 0x101   :  { %v34_v9 = vpop.permute.xlu1 %33 }
 0x102   :  { %v37_v10 = vsel %vm36_vm1, %v32_v8, %v34_v9 }
 0x103   :  { %40 = vrot.lane.b32.xlu1 %v37_v10, %s125_s0  ;;  %38 = vrot.lane.b32.xlu0 %v37_v10, %s126_s22 }
 0x175   :  { %v41_v13 = vpop.permute.xlu1 %40  ;;  %v39_v14 = vpop.permute.xlu0 %38 }
 0x176   :  { %v44_v15 = vsel %vm43_vm2, %v39_v14, %v41_v13 }
 0x177   :  { %v47_v16 = vsel %vm46_vm3, %v44_v15, %v21_v0 }
 0x178   :  { %48 = vst [vmem:[#allocation5] sm:$0x3] %v47_v16 }
 0x179   :  { %105 = shalt.err (!%p102_p12)
}
 0x17a   :  { %s106_s28 = scalar_lea.hbm %s163_s1, 32 }
 0x17b   :  { %p107_p13 = scmp.ne.s32.totalorder %s163_s1, %s106_s28  ;;  %p110_p0 = scmp.lt.u32.totalorder %s106_s28, %s163_s1 }
 0x17d   :  { %p112_p1 = pnand %p110_p0, %p107_p13 }
 0x17f   :  { %115 = shalt.err (!%p112_p1)
}
 0x180   :  { %58 = dma.vmem_to_hbm [thread:$0]  %s56_s24, 32, %s163_s1, [#allocation4]  }
 0x181   :  { %118 = dma.done.wait [#allocation4], 32  }
 0x182   :  { %119 = vsyncadd [#allocation4], 4294967264 }
 0x183   :  { %62 = vsyncpa [#allocation3], 1 }
 0x184   :  { %63 = vsyncpa [#allocation4], 1 }

</bundles_post_ra>
